<compile_context>
chip_gen: v7x
topology: tpu7x:2x2x1
jax: 0.10.0
libtpu: 0.0.40
codegen_flags: <defaults>
</compile_context>

<pallas_src>
import functools
import math

import jax
import jax.numpy as jnp
from jax.experimental import pallas as pl
from jax.experimental.pallas import tpu as pltpu


_VMEM = pl.BlockSpec(memory_space=pltpu.MemorySpace.VMEM)


# ----------------------------------------------------------------------------
# Fused forward kernel: encoders -> packed Q|O and K|V projections ->
# cross attention -> pairwise cosine similarity, all resident in VMEM.
# ----------------------------------------------------------------------------
def _fused_forward_kernel(
    img_ref, aud_ref,
    w_img_ref, b_img_ref,
    w_aud_ref, b_aud_ref,
    w_qo_ref, b_qo_ref,
    w_kv_ref, b_kv_ref,
    o_ref,
    *, embed_dim, eps, n_valid_aud, n_pad_aud,
):
    f32 = jnp.float32
    bf16 = jnp.bfloat16
    d = embed_dim

    # --- backbone stand-ins: bf16 weight matmuls, f32 accumulation ---
    mvsa = (jnp.dot(img_ref[...], w_img_ref[...], preferred_element_type=f32)
            + b_img_ref[...])                                          # [Bv, D] f32
    audf = (jnp.dot(aud_ref[...], w_aud_ref[...], preferred_element_type=f32)
            + b_aud_ref[...])                                          # [Bt, D] f32

    # --- packed projections: [Q | O] from visual, [K | V] from audio (N = 2D) ---
    # (attention scale is pre-folded into the Q half of w_qo at init time)
    qo = (jnp.dot(mvsa.astype(bf16), w_qo_ref[...], preferred_element_type=f32)
          + b_qo_ref[...])                                             # [Bv, 2D]
    kv = (jnp.dot(audf.astype(bf16), w_kv_ref[...], preferred_element_type=f32)
          + b_kv_ref[...])                                             # [Bt, 2D]
    q, mvsa1 = qo[:, :d], qo[:, d:]
    k, v = kv[:, :d], kv[:, d:]

    # --- scaled dot-product cross attention: softmax(q k^T) @ v ---
    # contract last dims directly (no .T -> no XLU relayout before the MXU)
    s = jax.lax.dot_general(q, k, (((1,), (1,)), ((), ())),
                            preferred_element_type=f32)                # [Bv, Bt_pad]
    if n_pad_aud > n_valid_aud:
        # mask padded audio keys out of the softmax (padding must not change results)
        col = jax.lax.broadcasted_iota(jnp.int32, s.shape, 1)
        s = jnp.where(col < n_valid_aud, s, -1e30)
    s = s - jnp.max(s, axis=-1, keepdims=True)
    p = jnp.exp(s)
    p = p * pl.reciprocal(jnp.sum(p, axis=-1, keepdims=True), approx=True)
    ft = jnp.dot(p.astype(bf16), v.astype(bf16),
                 preferred_element_type=f32)                           # [Bv, D] f32

    # --- pairwise cosine similarity (retrieval-style [Bv, Bv] sim matrix) ---
    a = mvsa1 * jax.lax.rsqrt(jnp.sum(mvsa1 * mvsa1, axis=-1, keepdims=True) + eps)
    b = ft * jax.lax.rsqrt(jnp.sum(ft * ft, axis=-1, keepdims=True) + eps)
    # Note: at this size the [Bp, Bp] store is a single (masked) vst; if B grows,
    # pad the last dim to a multiple of 128 for unmasked lane-dense stores.
    o_ref[...] = jax.lax.dot_general(a, b, (((1,), (1,)), ((), ())),
                                     preferred_element_type=f32)


# ----------------------------------------------------------------------------
# Parameter init (deterministic, in-script). Weights are cast to bf16 once here;
# Q/O and K/V projection weights are concatenated for wide (N=2D) matmuls and the
# attention scale is folded into the Q half.
# ----------------------------------------------------------------------------
def init_params(img_shape, aud_shape, embed_dim=128, seed=0):
    key = jax.random.PRNGKey(seed)
    k_img, k_aud, k_q, k_k, k_v, k_o = jax.random.split(key, 6)

    img_in = int(math.prod(img_shape[1:]))
    aud_in = int(math.prod(aud_shape[1:]))

    def lin(k, fan_in, fan_out):
        w = jax.random.normal(k, (fan_in, fan_out), jnp.float32) / math.sqrt(fan_in)
        b = jnp.zeros((1, fan_out), jnp.float32)
        return w, b

    W_img, b_img = lin(k_img, img_in, embed_dim)   # CrossFormer stand-in
    W_aud, b_aud = lin(k_aud, aud_in, embed_dim)   # sresnet18 stand-in
    W_q, b_q = lin(k_q, embed_dim, embed_dim)      # CrossAttention projections
    W_k, b_k = lin(k_k, embed_dim, embed_dim)
    W_v, b_v = lin(k_v, embed_dim, embed_dim)
    W_o, b_o = lin(k_o, embed_dim, embed_dim)

    # fold 1/sqrt(D) attention scale into the Q projection (free at runtime)
    scale = 1.0 / math.sqrt(embed_dim)
    W_q = W_q * scale
    b_q = b_q * scale

    return {
        "W_img": W_img.astype(jnp.bfloat16), "b_img": b_img,
        "W_aud": W_aud.astype(jnp.bfloat16), "b_aud": b_aud,
        "W_qo": jnp.concatenate([W_q, W_o], axis=1).astype(jnp.bfloat16),
        "b_qo": jnp.concatenate([b_q, b_o], axis=1),
        "W_kv": jnp.concatenate([W_k, W_v], axis=1).astype(jnp.bfloat16),
        "b_kv": jnp.concatenate([b_k, b_v], axis=1),
    }


def _round_up(x, m):
    return ((x + m - 1) // m) * m


# ----------------------------------------------------------------------------
# BaseModel forward (flag=False, val=False path) -> dual_sim
# ----------------------------------------------------------------------------
@jax.jit
def base_model_forward(img, aud, params):
    b_v = img.shape[0]
    b_t = aud.shape[0]
    d = params["W_qo"].shape[1] // 2

    img_flat = img.reshape(b_v, -1).astype(jnp.bfloat16)
    aud_flat = aud.reshape(b_t, -1).astype(jnp.bfloat16)

    # pad the batch once to the 8-sublane granule (padded keys masked in-kernel)
    bp_v = max(8, _round_up(b_v, 8))
    bp_t = max(8, _round_up(b_t, 8))
    img_flat = jnp.pad(img_flat, ((0, bp_v - b_v), (0, 0)))
    aud_flat = jnp.pad(aud_flat, ((0, bp_t - b_t), (0, 0)))

    kernel = functools.partial(
        _fused_forward_kernel,
        embed_dim=d,
        eps=1e-8,
        n_valid_aud=b_t,
        n_pad_aud=bp_t,
    )

    dual_sim_pad = pl.pallas_call(
        kernel,
        out_shape=jax.ShapeDtypeStruct((bp_v, bp_v), jnp.float32),
        in_specs=[_VMEM] * 10,
        out_specs=_VMEM,
    )(
        img_flat, aud_flat,
        params["W_img"], params["b_img"],
        params["W_aud"], params["b_aud"],
        params["W_qo"], params["b_qo"],
        params["W_kv"], params["b_kv"],
    )
    return dual_sim_pad[:b_v, :b_v]


if __name__ == "__main__":
    key = jax.random.PRNGKey(0)
    k_img, k_aud = jax.random.split(key)

    # small shapes: image NCHW, audio spectrogram NCHW
    img = jax.random.normal(k_img, (2, 4, 16, 16), jnp.float32)
    aud = jax.random.normal(k_aud, (2, 1, 16, 16), jnp.float32)

    params = init_params(img.shape, aud.shape, embed_dim=128, seed=0)

    dual_sim = base_model_forward(img, aud, params)
    dual_sim = jax.block_until_ready(dual_sim)

    assert dual_sim.shape == (2, 2)
    assert bool(jnp.all(jnp.isfinite(dual_sim)))
    print("KERNEL_OK")
</pallas_src>

<mosaic_0001>
module attributes {stable_mosaic.version = 11 : i64} {
  func.func @_fused_forward_kernel(%arg0: memref<8x1024xbf16, #tpu.memory_space<vmem>>, %arg1: memref<8x256xbf16, #tpu.memory_space<vmem>>, %arg2: memref<1024x128xbf16, #tpu.memory_space<vmem>>, %arg3: memref<1x128xf32, #tpu.memory_space<vmem>>, %arg4: memref<256x128xbf16, #tpu.memory_space<vmem>>, %arg5: memref<1x128xf32, #tpu.memory_space<vmem>>, %arg6: memref<128x256xbf16, #tpu.memory_space<vmem>>, %arg7: memref<1x256xf32, #tpu.memory_space<vmem>>, %arg8: memref<128x256xbf16, #tpu.memory_space<vmem>>, %arg9: memref<1x256xf32, #tpu.memory_space<vmem>>, %arg10: memref<8x8xf32, #tpu.memory_space<vmem>>) attributes {dimension_semantics = [], scalar_prefetch = 0 : i64, scratch_operands = 0 : i64, tpu.core_type = #tpu.core_type<tc>} {
    %c0 = arith.constant 0 : index
    %c0_0 = arith.constant 0 : index
    %0 = vector.load %arg0[%c0, %c0_0] : memref<8x1024xbf16, #tpu.memory_space<vmem>>, vector<8x1024xbf16>
    %c0_1 = arith.constant 0 : index
    %c0_2 = arith.constant 0 : index
    %1 = vector.load %arg2[%c0_1, %c0_2] : memref<1024x128xbf16, #tpu.memory_space<vmem>>, vector<1024x128xbf16>
    %cst = arith.constant dense<0.000000e+00> : vector<8x128xf32>
    %2 = tpu.matmul %0, %1, %cst {dimension_numbers = #tpu.dot_dimension_numbers<[1], [0], [0], [1], [0, 0, 1, 1], [], []>} : vector<8x1024xbf16>, vector<1024x128xbf16>, vector<8x128xf32> -> vector<8x128xf32>
    %c0_3 = arith.constant 0 : index
    %c0_4 = arith.constant 0 : index
    %3 = vector.load %arg3[%c0_3, %c0_4] : memref<1x128xf32, #tpu.memory_space<vmem>>, vector<1x128xf32>
    %4 = vector.broadcast %3 : vector<1x128xf32> to vector<8x128xf32>
    %5 = arith.addf %2, %4 : vector<8x128xf32>
    %c0_5 = arith.constant 0 : index
    %c0_6 = arith.constant 0 : index
    %6 = vector.load %arg1[%c0_5, %c0_6] : memref<8x256xbf16, #tpu.memory_space<vmem>>, vector<8x256xbf16>
    %c0_7 = arith.constant 0 : index
    %c0_8 = arith.constant 0 : index
    %7 = vector.load %arg4[%c0_7, %c0_8] : memref<256x128xbf16, #tpu.memory_space<vmem>>, vector<256x128xbf16>
    %cst_9 = arith.constant dense<0.000000e+00> : vector<8x128xf32>
    %8 = tpu.matmul %6, %7, %cst_9 {dimension_numbers = #tpu.dot_dimension_numbers<[1], [0], [0], [1], [0, 0, 1, 1], [], []>} : vector<8x256xbf16>, vector<256x128xbf16>, vector<8x128xf32> -> vector<8x128xf32>
    %c0_10 = arith.constant 0 : index
    %c0_11 = arith.constant 0 : index
    %9 = vector.load %arg5[%c0_10, %c0_11] : memref<1x128xf32, #tpu.memory_space<vmem>>, vector<1x128xf32>
    %10 = vector.broadcast %9 : vector<1x128xf32> to vector<8x128xf32>
    %11 = arith.addf %8, %10 : vector<8x128xf32>
    %12 = arith.truncf %5 : vector<8x128xf32> to vector<8x128xbf16>
    %c0_12 = arith.constant 0 : index
    %c0_13 = arith.constant 0 : index
    %13 = vector.load %arg6[%c0_12, %c0_13] : memref<128x256xbf16, #tpu.memory_space<vmem>>, vector<128x256xbf16>
    %cst_14 = arith.constant dense<0.000000e+00> : vector<8x256xf32>
    %14 = tpu.matmul %12, %13, %cst_14 {dimension_numbers = #tpu.dot_dimension_numbers<[1], [0], [0], [1], [0, 0, 1, 1], [], []>} : vector<8x128xbf16>, vector<128x256xbf16>, vector<8x256xf32> -> vector<8x256xf32>
    %c0_15 = arith.constant 0 : index
    %c0_16 = arith.constant 0 : index
    %15 = vector.load %arg7[%c0_15, %c0_16] : memref<1x256xf32, #tpu.memory_space<vmem>>, vector<1x256xf32>
    %16 = vector.broadcast %15 : vector<1x256xf32> to vector<8x256xf32>
    %17 = arith.addf %14, %16 : vector<8x256xf32>
    %18 = arith.truncf %11 : vector<8x128xf32> to vector<8x128xbf16>
    %c0_17 = arith.constant 0 : index
    %c0_18 = arith.constant 0 : index
    %19 = vector.load %arg8[%c0_17, %c0_18] : memref<128x256xbf16, #tpu.memory_space<vmem>>, vector<128x256xbf16>
    %cst_19 = arith.constant dense<0.000000e+00> : vector<8x256xf32>
    %20 = tpu.matmul %18, %19, %cst_19 {dimension_numbers = #tpu.dot_dimension_numbers<[1], [0], [0], [1], [0, 0, 1, 1], [], []>} : vector<8x128xbf16>, vector<128x256xbf16>, vector<8x256xf32> -> vector<8x256xf32>
    %c0_20 = arith.constant 0 : index
    %c0_21 = arith.constant 0 : index
    %21 = vector.load %arg9[%c0_20, %c0_21] : memref<1x256xf32, #tpu.memory_space<vmem>>, vector<1x256xf32>
    %22 = vector.broadcast %21 : vector<1x256xf32> to vector<8x256xf32>
    %23 = arith.addf %20, %22 : vector<8x256xf32>
    %24 = vector.extract_strided_slice %17 {offsets = [0, 0], sizes = [8, 128], strides = [1, 1]} : vector<8x256xf32> to vector<8x128xf32>
    %25 = vector.extract_strided_slice %17 {offsets = [0, 128], sizes = [8, 128], strides = [1, 1]} : vector<8x256xf32> to vector<8x128xf32>
    %26 = vector.extract_strided_slice %23 {offsets = [0, 0], sizes = [8, 128], strides = [1, 1]} : vector<8x256xf32> to vector<8x128xf32>
    %27 = vector.extract_strided_slice %23 {offsets = [0, 128], sizes = [8, 128], strides = [1, 1]} : vector<8x256xf32> to vector<8x128xf32>
    %cst_22 = arith.constant dense<0.000000e+00> : vector<8x8xf32>
    %28 = tpu.matmul %24, %26, %cst_22 {dimension_numbers = #tpu.dot_dimension_numbers<[1], [1], [0], [0], [0, 0, 1, 0], [], []>} : vector<8x128xf32>, vector<8x128xf32>, vector<8x8xf32> -> vector<8x8xf32>
    %29 = tpu.iota {dimensions = array<i32: 1>} : vector<8x8xi32>
    %c2_i32 = arith.constant 2 : i32
    %30 = vector.broadcast %c2_i32 : i32 to vector<8x8xi32>
    %31 = arith.cmpi slt, %29, %30 : vector<8x8xi32>
    %cst_23 = arith.constant -1.000000e+30 : f32
    %32 = vector.broadcast %cst_23 : f32 to vector<8x8xf32>
    %33 = arith.select %31, %28, %32 : vector<8x8xi1>, vector<8x8xf32>
    %cst_24 = arith.constant dense<0xFF800000> : vector<8xf32>
    %34 = vector.multi_reduction <maximumf>, %33, %cst_24 [1] : vector<8x8xf32> to vector<8xf32>
    %35 = vector.shape_cast %34 : vector<8xf32> to vector<8x1xf32>
    %36 = vector.broadcast %35 : vector<8x1xf32> to vector<8x8xf32>
    %37 = arith.subf %33, %36 : vector<8x8xf32>
    %38 = math.exp %37 : vector<8x8xf32>
    %cst_25 = arith.constant dense<0.000000e+00> : vector<8xf32>
    %39 = vector.multi_reduction <add>, %38, %cst_25 [1] : vector<8x8xf32> to vector<8xf32>
    %40 = vector.shape_cast %39 : vector<8xf32> to vector<8x1xf32>
    %41 = tpu.reciprocal %40 {approx = true} : vector<8x1xf32> -> vector<8x1xf32>
    %42 = vector.broadcast %41 : vector<8x1xf32> to vector<8x8xf32>
    %43 = arith.mulf %38, %42 : vector<8x8xf32>
    %44 = arith.truncf %43 : vector<8x8xf32> to vector<8x8xbf16>
    %45 = arith.truncf %27 : vector<8x128xf32> to vector<8x128xbf16>
    %cst_26 = arith.constant dense<0.000000e+00> : vector<8x128xf32>
    %46 = tpu.matmul %44, %45, %cst_26 {dimension_numbers = #tpu.dot_dimension_numbers<[1], [0], [0], [1], [0, 0, 1, 1], [], []>} : vector<8x8xbf16>, vector<8x128xbf16>, vector<8x128xf32> -> vector<8x128xf32>
    %47 = arith.mulf %25, %25 : vector<8x128xf32>
    %cst_27 = arith.constant dense<0.000000e+00> : vector<8xf32>
    %48 = vector.multi_reduction <add>, %47, %cst_27 [1] : vector<8x128xf32> to vector<8xf32>
    %49 = vector.shape_cast %48 : vector<8xf32> to vector<8x1xf32>
    %cst_28 = arith.constant 9.99999993E-9 : f32
    %50 = vector.broadcast %cst_28 : f32 to vector<8x1xf32>
    %51 = arith.addf %49, %50 : vector<8x1xf32>
    %52 = math.rsqrt %51 : vector<8x1xf32>
    %53 = vector.broadcast %52 : vector<8x1xf32> to vector<8x128xf32>
    %54 = arith.mulf %25, %53 : vector<8x128xf32>
    %55 = arith.mulf %46, %46 : vector<8x128xf32>
    %cst_29 = arith.constant dense<0.000000e+00> : vector<8xf32>
    %56 = vector.multi_reduction <add>, %55, %cst_29 [1] : vector<8x128xf32> to vector<8xf32>
    %57 = vector.shape_cast %56 : vector<8xf32> to vector<8x1xf32>
    %cst_30 = arith.constant 9.99999993E-9 : f32
    %58 = vector.broadcast %cst_30 : f32 to vector<8x1xf32>
    %59 = arith.addf %57, %58 : vector<8x1xf32>
    %60 = math.rsqrt %59 : vector<8x1xf32>
    %61 = vector.broadcast %60 : vector<8x1xf32> to vector<8x128xf32>
    %62 = arith.mulf %46, %61 : vector<8x128xf32>
    %cst_31 = arith.constant dense<0.000000e+00> : vector<8x8xf32>
    %63 = tpu.matmul %54, %62, %cst_31 {dimension_numbers = #tpu.dot_dimension_numbers<[1], [1], [0], [0], [0, 0, 1, 0], [], []>} : vector<8x128xf32>, vector<8x128xf32>, vector<8x8xf32> -> vector<8x8xf32>
    %c0_32 = arith.constant 0 : index
    %c0_33 = arith.constant 0 : index
    %64 = vector.load %arg10[%c0_32, %c0_33] : memref<8x8xf32, #tpu.memory_space<vmem>>, vector<8x8xf32>
    tpu.vector_store %arg10[%c0_32, %c0_33], %63 {strides = array<i32>} : memref<8x8xf32, #tpu.memory_space<vmem>>, vector<8x8xf32>,
    return
  }
}

</mosaic_0001>

<bundles_post_ra>
// kernel: base_model_forward.1
= control target key start
LH: loop header
LB: loop body
LE: loop exit
PB: predicated region body
PF: predicated region fallthrough
CT: control target
= control target key end

     0   :  { %15 = vsyncpa [#allocation3], 0  ;;  %s2258_s0 = inlined_call_operand.vmem [shape: bf16[8,1024], index: 0, kind: input, shape index: {}]   ;;  %s2259_s1 = inlined_call_operand.vmem [shape: bf16[8,256], index: 1, kind: input, shape index: {}]   ;;  %s2260_s2 = inlined_call_operand.hbm [shape: bf16[1024,128], index: 2, kind: input, shape index: {}]   ;;  %s2261_s3 = inlined_call_operand.vmem [shape: f32[1,128], index: 3, kind: input, shape index: {}]   ;;  %s2262_s4 = inlined_call_operand.vmem [shape: bf16[256,128], index: 4, kind: input, shape index: {}]   ;;  %s2263_s5 = inlined_call_operand.vmem [shape: f32[1,128], index: 5, kind: input, shape index: {}]   ;;  %s2264_s6 = inlined_call_operand.vmem [shape: bf16[128,256], index: 6, kind: input, shape index: {}]   ;;  %s2265_s7 = inlined_call_operand.hbm [shape: f32[1,256], index: 7, kind: input, shape index: {}]   ;;  %s2266_s8 = inlined_call_operand.vmem [shape: bf16[128,256], index: 8, kind: input, shape index: {}]   ;;  %s2267_s9 = inlined_call_operand.hbm [shape: f32[1,256], index: 9, kind: input, shape index: {}]   ;;  %s2268_s10 = inlined_call_operand.vmem [shape: f32[8,8], index: 10, kind: output, shape index: {}]  }
   0x1   :  { %16 = vsyncpa [#allocation5], 0  ;;  %s1972_s13 = smov [#allocation4]   ;;  %s1973_s15 = smov [#allocation2]  }
   0x2   :  { %s47_s14 = sshll.u32 %s1972_s13, 4  ;;  %s26_s16 = sshll.u32 %s1973_s15, 4  ;;  %s48_s14 = int_to_ptr.vmem [resolvable:$true] %s47_s14  ;;  %s2035_s16 = int_to_ptr.vmem [resolvable:$true] %s26_s16 }
   0x3   :  { %s1902_s19 = scalar_lea.hbm %s2265_s7, 32 }
   0x4   :  { %p1903_p0 = scmp.ne.s32.totalorder %s2265_s7, %s1902_s19  ;;  %p1906_p1 = scmp.lt.u32.totalorder %s1902_s19, %s2265_s7 }
   0x6   :  { %p1908_p2 = pnand %p1906_p1, %p1903_p0 }
   0x8   :  { %1911 = shalt.err (!%p1908_p2)
}
   0x9   :  { %s1912_s24 = scalar_lea.vmem %s48_s14, 32  ;;  %p1917_p4 = scmp.lt.s32.totalorder %s48_s14, %s48_s14 }
   0xa   :  { %p1913_p3 = scmp.ne.s32.totalorder %s48_s14, %s1912_s24  ;;  %p1918_p5 = scmp.lt.s32.totalorder %s1912_s24, %s1912_s24 }
   0xc   :  { %p1919_p6 = por %p1918_p5, %p1917_p4 }
   0xe   :  { %p1920_p7 = pnand %p1919_p6, %p1913_p3 }
  0x10   :  { %1923 = shalt.err (!%p1920_p7)
}
  0x11   :  { %50 = dma.hbm_to_vmem [thread:$0]  %s2265_s7, 32, %s48_s14, [#allocation5]  }
  0x12   :  { %s1924_s29 = scalar_lea.hbm %s2260_s2, 8192 }
  0x13   :  { %p1925_p8 = scmp.ne.s32.totalorder %s2260_s2, %s1924_s29  ;;  %p1928_p9 = scmp.lt.u32.totalorder %s1924_s29, %s2260_s2 }
  0x15   :  { %p1930_p10 = pnand %p1928_p9, %p1925_p8 }
  0x17   :  { %1933 = shalt.err (!%p1930_p10)
}
  0x18   :  { %s1934_s15 = scalar_lea.vmem %s2035_s16, 8192  ;;  %p1939_p12 = scmp.lt.s32.totalorder %s2035_s16, %s2035_s16 }
  0x19   :  { %p1935_p11 = scmp.ne.s32.totalorder %s2035_s16, %s1934_s15  ;;  %p1940_p13 = scmp.lt.s32.totalorder %s1934_s15, %s1934_s15 }
  0x1b   :  { %p1941_p0 = por %p1940_p13, %p1939_p12 }
  0x1d   :  { %p1942_p1 = pnand %p1941_p0, %p1935_p11 }
  0x1f   :  { %1945 = shalt.err (!%p1942_p1)
}
  0x20   :  { %s1974_s7 = smov 64   ;;  %s1975_s14 = smov 4  }
  0x21   :  { %32 = dma.hbm_to_vmem [thread:$0]  %s2260_s2, 8192, %s2035_s16, [#allocation3], %s1974_s7, %s1974_s7, %s1975_s14  }
  0x22   :  { %s1976_s19 = smov [#allocation6]   ;;  %s1946_s23 = scalar_lea.hbm %s2267_s9, 32 }
  0x23   :  { %s59_s20 = sshll.u32 %s1976_s19, 4  ;;  %p1947_p2 = scmp.ne.s32.totalorder %s2267_s9, %s1946_s23  ;;  %s60_s20 = int_to_ptr.vmem [resolvable:$true] %s59_s20 }
  0x24   :  { %p1950_p3 = scmp.lt.u32.totalorder %s1946_s23, %s2267_s9 }
  0x26   :  { %p1952_p4 = pnand %p1950_p3, %p1947_p2 }
  0x28   :  { %1955 = shalt.err (!%p1952_p4)
}
  0x29   :  { %s1956_s28 = scalar_lea.vmem %s60_s20, 32  ;;  %p1961_p6 = scmp.lt.s32.totalorder %s60_s20, %s60_s20 }
  0x2a   :  { %p1957_p5 = scmp.ne.s32.totalorder %s60_s20, %s1956_s28  ;;  %p1962_p7 = scmp.lt.s32.totalorder %s1956_s28, %s1956_s28 }
  0x2c   :  { %p1963_p8 = por %p1962_p7, %p1961_p6 }
  0x2e   :  { %p1964_p9 = pnand %p1963_p8, %p1957_p5 }
  0x30   :  { %1967 = shalt.err (!%p1964_p9)
}
  0x31   :  { %62 = dma.hbm_to_vmem [thread:$0]  %s2267_s9, 32, %s60_s20, [#allocation5]  }
  0x32   :  { %1968 = dma.done.wait [#allocation3], 8192  }
  0x33   :  { %1969 = vsyncadd [#allocation3], 4294959104 }
  0x34   :  { %1970 = dma.done.wait [#allocation5], 64  }
  0x35   :  { %1971 = vsyncadd [#allocation5], 4294967232  ;;  %v1756_v0 = vld [vmem:[#allocation2 + $0x40] sm:$0xff]   ;;  %v1760_v4 = vld [vmem:[#allocation2 + $0x48] sm:$0xff]   ;;  %vm1979_vm0 = vmmov 0   ;;  %vm1358_vm1 = vcmask 1043456  }
  0x36   :  { %v1757_v1 = vld [vmem:[#allocation2] sm:$0xff]   ;;  %1616 = vmatprep.subr.bf16.mxu0 %v1756_v0  ;;  %v1761_v5 = vld [vmem:[#allocation2 + $0x8] sm:$0xff]   ;;  %v1764_v8 = vld [vmem:[#allocation2 + $0x50] sm:$0xff]   ;;  %vm1341_vm3 = vcmask 64512  }
  0x37   :  { %v1758_v2 = vld [vmem:[#allocation2 + $0xc0] sm:$0xff]   ;;  %1617 = vmatpush3.bf16.msra.mxu0 %v1757_v1  ;;  %v1762_v6 = vld [vmem:[#allocation2 + $0xc8] sm:$0xff]   ;;  %v1765_v9 = vld [vmem:[#allocation2 + $0x10] sm:$0xff]  }
  0x38   :  { %v1759_v3 = vld [vmem:[#allocation2 + $0x80] sm:$0xff]   ;;  %1638 = vmatprep.subr.bf16.mxu1 %v1758_v2  ;;  %1618 = vmatprep.subr.bf16.mxu0 %v1760_v4  ;;  %v1763_v7 = vld [vmem:[#allocation2 + $0x88] sm:$0xff]   ;;  %v1766_v10 = vld [vmem:[#allocation2 + $0xd0] sm:$0xff]  }
  0x39   :  { %1639 = vmatpush3.bf16.msra.mxu1 %v1759_v3  ;;  %v1767_v11 = vld [vmem:[#allocation2 + $0x90] sm:$0xff]   ;;  %v1768_v12 = vld [vmem:[#allocation2 + $0x58] sm:$0xff]   ;;  %v1772_v16 = vld [vmem:[#allocation2 + $0x60] sm:$0xff]  }
  0x3a   :  { %1640 = vmatprep.subr.bf16.mxu1 %v1762_v6  ;;  %v1769_v13 = vld [vmem:[#allocation2 + $0x18] sm:$0xff]   ;;  %v1773_v17 = vld [vmem:[#allocation2 + $0x20] sm:$0xff]   ;;  %v1776_v20 = vld [vmem:[#allocation2 + $0x68] sm:$0xff]  }
  0x3b   :  { %1619 = vmatpush3.bf16.msra.mxu0 %v1761_v5  ;;  %v1770_v14 = vld [vmem:[#allocation2 + $0xd8] sm:$0xff]   ;;  %v1774_v18 = vld [vmem:[#allocation2 + $0xe0] sm:$0xff]   ;;  %v1777_v21 = vld [vmem:[#allocation2 + $0x28] sm:$0xff]  }
  0x3c   :  { %1620 = vmatprep.subr.bf16.mxu0 %v1764_v8  ;;  %v1771_v15 = vld [vmem:[#allocation2 + $0x98] sm:$0xff]   ;;  %v1775_v19 = vld [vmem:[#allocation2 + $0xa0] sm:$0xff]   ;;  %v1778_v22 = vld [vmem:[#allocation2 + $0xe8] sm:$0xff]  }
  0x3d   :  { %1641 = vmatpush3.bf16.msra.mxu1 %v1763_v7  ;;  %v1779_v23 = vld [vmem:[#allocation2 + $0xa8] sm:$0xff]   ;;  %v1780_v24 = vld [vmem:[#allocation2 + $0x70] sm:$0xff]   ;;  %v1784_v28 = vld [vmem:[#allocation2 + $0x78] sm:$0xff]  }
  0x3e   :  { %1642 = vmatprep.subr.bf16.mxu1 %v1766_v10  ;;  %v1781_v25 = vld [vmem:[#allocation2 + $0x30] sm:$0xff]   ;;  %v1785_v29 = vld [vmem:[#allocation2 + $0x38] sm:$0xff]   ;;  %v73_v31 = vld [vmem:[%s2258_s0] sm:$0xff] }
  0x3f   :  { %1621 = vmatpush3.bf16.msra.mxu0 %v1765_v9  ;;  %v1782_v26 = vld [vmem:[#allocation2 + $0xf0] sm:$0xff]   ;;  %v1786_v30 = vld [vmem:[#allocation2 + $0xf8] sm:$0xff]   ;;  %v1492_v32 = vcombine.low %v73_v31, %v73_v31  ;;  %v1493_v33 = vcombine.high %v73_v31, %v73_v31  ;;  %v1790_v35 = vld [vmem:[#allocation2 + $0x140] sm:$0xff]  }
  0x40   :  { %1622 = vmatprep.subr.bf16.mxu0 %v1768_v12  ;;  %v1783_v27 = vld [vmem:[#allocation2 + $0xb0] sm:$0xff]   ;;  %v1789_v34 = vld [vmem:[#allocation2 + $0xb8] sm:$0xff]   ;;  %v74_v36 = vld [vmem:[%s2258_s0 + $0x8] sm:$0xff] }
  0x41   :  { %1643 = vmatpush3.bf16.msra.mxu1 %v1767_v11  ;;  %656 = vmatprep.mubr.bf16.mxu0 %v1493_v33  ;;  %v1494_v37 = vcombine.low %v74_v36, %v74_v36  ;;  %v1495_v38 = vcombine.high %v74_v36, %v74_v36  ;;  %v1793_v39 = vld [vmem:[#allocation2 + $0x100] sm:$0xff]   ;;  %v1796_v42 = vld [vmem:[#allocation2 + $0x148] sm:$0xff]   ;;  %v1800_v46 = vld [vmem:[#allocation2 + $0x150] sm:$0xff]  }
  0x42   :  { %1644 = vmatprep.subr.bf16.mxu1 %v1770_v14  ;;  %v1794_v40 = vld [vmem:[#allocation2 + $0x1c0] sm:$0xff]   ;;  %v1797_v43 = vld [vmem:[#allocation2 + $0x108] sm:$0xff]   ;;  %v1801_v47 = vld [vmem:[#allocation2 + $0x110] sm:$0xff]  }
  0x43   :  { %1623 = vmatpush3.bf16.msra.mxu0 %v1769_v13  ;;  %696 = vmatprep.mubr.bf16.mxu1 %v1495_v38  ;;  %v1795_v41 = vld [vmem:[#allocation2 + $0x180] sm:$0xff]   ;;  %v1798_v44 = vld [vmem:[#allocation2 + $0x1c8] sm:$0xff]   ;;  %v1802_v48 = vld [vmem:[#allocation2 + $0x1d0] sm:$0xff]  }
  0x44   :  { %1624 = vmatprep.subr.bf16.mxu0 %v1772_v16  ;;  %v1799_v45 = vld [vmem:[#allocation2 + $0x188] sm:$0xff]   ;;  %v1803_v49 = vld [vmem:[#allocation2 + $0x190] sm:$0xff]   ;;  %v1804_v50 = vld [vmem:[#allocation2 + $0x158] sm:$0xff]  }
  0x45   :  { %1645 = vmatpush3.bf16.msra.mxu1 %v1771_v15  ;;  %v1805_v51 = vld [vmem:[#allocation2 + $0x118] sm:$0xff]   ;;  %v1808_v54 = vld [vmem:[#allocation2 + $0x160] sm:$0xff]   ;;  %v1812_v58 = vld [vmem:[#allocation2 + $0x168] sm:$0xff]  }
  0x46   :  { %1646 = vmatprep.subr.bf16.mxu1 %v1774_v18  ;;  %v1806_v52 = vld [vmem:[#allocation2 + $0x1d8] sm:$0xff]   ;;  %v1809_v55 = vld [vmem:[#allocation2 + $0x120] sm:$0xff]   ;;  %v1813_v59 = vld [vmem:[#allocation2 + $0x128] sm:$0xff]  }
  0x47   :  { %1625 = vmatpush3.bf16.msra.mxu0 %v1773_v17  ;;  %v1807_v53 = vld [vmem:[#allocation2 + $0x198] sm:$0xff]   ;;  %v1810_v56 = vld [vmem:[#allocation2 + $0x1e0] sm:$0xff]   ;;  %v1814_v60 = vld [vmem:[#allocation2 + $0x1e8] sm:$0xff]  }
  0x48   :  { %1626 = vmatprep.subr.bf16.mxu0 %v1776_v20  ;;  %v1811_v57 = vld [vmem:[#allocation2 + $0x1a0] sm:$0xff]   ;;  %v1815_v61 = vld [vmem:[#allocation2 + $0x1a8] sm:$0xff]   ;;  %v1816_v62 = vld [vmem:[#allocation2 + $0x170] sm:$0xff]  }
  0x49   :  { %1647 = vmatpush3.bf16.msra.mxu1 %v1775_v19  ;;  %v1817_v63 = vld [vmem:[#allocation2 + $0x130] sm:$0xff]   ;;  %v1820_v2 = vld [vmem:[#allocation2 + $0x178] sm:$0xff]   ;;  %v1826_v9 = vld [vmem:[%s2262_s4 + $0x40] sm:$0xff]  }
  0x4a   :  { %1648 = vmatprep.subr.bf16.mxu1 %v1778_v22  ;;  %v1818_v0 = vld [vmem:[#allocation2 + $0x1f0] sm:$0xff]   ;;  %v1821_v3 = vld [vmem:[#allocation2 + $0x138] sm:$0xff]   ;;  %v1829_v13 = vld [vmem:[%s2262_s4] sm:$0xff]  }
  0x4b   :  { %1627 = vmatpush3.bf16.msra.mxu0 %v1777_v21  ;;  %v1819_v1 = vld [vmem:[#allocation2 + $0x1b0] sm:$0xff]   ;;  %v1822_v4 = vld [vmem:[#allocation2 + $0x1f8] sm:$0xff]   ;;  %v1830_v14 = vld [vmem:[%s2262_s4 + $0x48] sm:$0xff]  }
  0x4c   :  { %1628 = vmatprep.subr.bf16.mxu0 %v1780_v24  ;;  %v75_v5 = vld [vmem:[%s2258_s0 + $0x10] sm:$0xff]  ;;  %v1825_v8 = vld [vmem:[#allocation2 + $0x1b8] sm:$0xff]   ;;  %v1831_v15 = vld [vmem:[%s2262_s4 + $0x8] sm:$0xff]  }
  0x4d   :  { %1649 = vmatpush3.bf16.msra.mxu1 %v1779_v23  ;;  %v1496_v6 = vcombine.low %v75_v5, %v75_v5  ;;  %v1497_v7 = vcombine.high %v75_v5, %v75_v5  ;;  %v76_v10 = vld [vmem:[%s2258_s0 + $0x18] sm:$0xff]  ;;  %v1832_v16 = vld [vmem:[%s2262_s4 + $0x50] sm:$0xff]   ;;  %v1836_v20 = vld [vmem:[%s2262_s4 + $0x60] sm:$0xff]  }
  0x4e   :  { %1650 = vmatprep.subr.bf16.mxu1 %v1782_v26  ;;  %v1498_v11 = vcombine.low %v76_v10, %v76_v10  ;;  %v1499_v12 = vcombine.high %v76_v10, %v76_v10  ;;  %v1833_v17 = vld [vmem:[%s2262_s4 + $0x10] sm:$0xff]   ;;  %v1834_v18 = vld [vmem:[%s2262_s4 + $0x58] sm:$0xff]   ;;  %v1837_v21 = vld [vmem:[%s2262_s4 + $0x20] sm:$0xff]  }
  0x4f   :  { %1629 = vmatpush3.bf16.msra.mxu0 %v1781_v25  ;;  %v1835_v19 = vld [vmem:[%s2262_s4 + $0x18] sm:$0xff]   ;;  %v1838_v22 = vld [vmem:[%s2262_s4 + $0x68] sm:$0xff]   ;;  %v784_v23 = vld [vmem:[%s2259_s1] sm:$0xff] }
  0x50   :  { %1630 = vmatprep.subr.bf16.mxu0 %v1784_v28  ;;  %v1566_v24 = vcombine.high %v784_v23, %v784_v23  ;;  %v1839_v25 = vld [vmem:[%s2262_s4 + $0x28] sm:$0xff]   ;;  %v1840_v26 = vld [vmem:[%s2262_s4 + $0x70] sm:$0xff]   ;;  %v1842_v28 = vld [vmem:[%s2262_s4 + $0x78] sm:$0xff]  }
  0x51   :  { %1651 = vmatpush3.bf16.msra.mxu1 %v1783_v27  ;;  %v1841_v27 = vld [vmem:[%s2262_s4 + $0x30] sm:$0xff]   ;;  %v1846_v31 = vld [vmem:[%s2264_s6] ss:$8 sps:$4 sm:$0xff]  }
  0x52   :  { %1652 = vmatprep.subr.bf16.mxu1 %v1786_v30  ;;  %v1565_v30 = vcombine.low %v784_v23, %v784_v23  ;;  %v1851_v33 = vld [vmem:[%s2264_s6 + $0x14] ss:$8 sps:$4 sm:$0xff]   ;;  %v1852_v36 = vld [vmem:[%s2264_s6 + $0x20] ss:$8 sps:$4 sm:$0xff]   ;;  %v1855_v38 = vld [vmem:[%s2264_s6 + $0x30] ss:$8 sps:$4 sm:$0xff]  }
  0x53   :  { %1631 = vmatpush3.bf16.msra.mxu0 %v1785_v29  ;;  %v1843_v29 = vld [vmem:[%s2262_s4 + $0x38] sm:$0xff]  }
  0x54   :  { %1660 = vmatprep.subr.bf16.mxu0 %v1790_v35  ;;  %v1854_v35 = vld [vmem:[%s2264_s6 + $0x24] ss:$8 sps:$4 sm:$0xff]  }
  0x55   :  { %1653 = vmatpush3.bf16.msra.mxu1 %v1789_v34  ;;  %v1849_v34 = vld [vmem:[%s2264_s6 + $0x10] ss:$8 sps:$4 sm:$0xff]  }
  0x56   :  { %657 = vmatmul.mubr.bf16.vlgmr.msra.gmra.mrb[0].mxu0 %v1492_v32  ;;  %1682 = vmatprep.subr.bf16.mxu1 %v1794_v40  ;;  %v1848_v32 = vld [vmem:[%s2264_s6 + $0x4] ss:$8 sps:$4 sm:$0xff]   ;;  %v1858_v40 = vld [vmem:[%s2264_s6 + $0x40] ss:$8 sps:$4 sm:$0xff]  }
  0x57   :  { %1661 = vmatpush3.bf16.msra.mxu0 %v1793_v39  ;;  %736 = vmatprep.mubr.bf16.mxu0 %v1497_v7  ;;  %v1860_v39 = vld [vmem:[%s2264_s6 + $0x44] ss:$8 sps:$4 sm:$0xff]  }
  0x58   :  { %697 = vmatmul.mubr.bf16.vlgmr.msra.gmra.mrb[0].mxu1 %v1494_v37  ;;  %1662 = vmatprep.subr.bf16.mxu0 %v1796_v42  ;;  %v1857_v37 = vld [vmem:[%s2264_s6 + $0x34] ss:$8 sps:$4 sm:$0xff]   ;;  %v1861_v42 = vld [vmem:[%s2264_s6 + $0x50] ss:$8 sps:$4 sm:$0xff]  }
  0x59   :  { %1683 = vmatpush3.bf16.msra.mxu1 %v1795_v41  ;;  %776 = vmatprep.mubr.bf16.mxu1 %v1499_v12  ;;  %v1863_v41 = vld [vmem:[%s2264_s6 + $0x54] ss:$8 sps:$4 sm:$0xff]  }
  0x5a   :  { %1684 = vmatprep.subr.bf16.mxu1 %v1798_v44  ;;  %v1864_v44 = vld [vmem:[%s2264_s6 + $0x60] ss:$8 sps:$4 sm:$0xff]  }
  0x5b   :  { %1663 = vmatpush3.bf16.msra.mxu0 %v1797_v43  ;;  %v1866_v43 = vld [vmem:[%s2264_s6 + $0x64] ss:$8 sps:$4 sm:$0xff]  }
  0x5c   :  { %1664 = vmatprep.subr.bf16.mxu0 %v1800_v46  ;;  %v1867_v46 = vld [vmem:[%s2264_s6 + $0x70] ss:$8 sps:$4 sm:$0xff]  }
  0x5d   :  { %1685 = vmatpush3.bf16.msra.mxu1 %v1799_v45  ;;  %v1869_v45 = vld [vmem:[%s2264_s6 + $0x74] ss:$8 sps:$4 sm:$0xff]  }
  0x5e   :  { %1686 = vmatprep.subr.bf16.mxu1 %v1802_v48  ;;  %v1870_v48 = vld [vmem:[%s2266_s8] ss:$8 sps:$4 sm:$0xff]  }
  0x5f   :  { %1665 = vmatpush3.bf16.msra.mxu0 %v1801_v47  ;;  %v1872_v47 = vld [vmem:[%s2266_s8 + $0x4] ss:$8 sps:$4 sm:$0xff]  }
  0x60   :  { %1666 = vmatprep.subr.bf16.mxu0 %v1804_v50  ;;  %v1873_v50 = vld [vmem:[%s2266_s8 + $0x10] ss:$8 sps:$4 sm:$0xff]  }
  0x61   :  { %1687 = vmatpush3.bf16.msra.mxu1 %v1803_v49  ;;  %v1977_v49 = vmov 0  }
  0x62   :  { %1688 = vmatprep.subr.bf16.mxu1 %v1806_v52  ;;  %v1878_v52 = vld [vmem:[%s2266_s8 + $0x24] ss:$8 sps:$4 sm:$0xff]  }
  0x63   :  { %1667 = vmatpush3.bf16.msra.mxu0 %v1805_v51  ;;  %v1875_v51 = vld [vmem:[%s2266_s8 + $0x14] ss:$8 sps:$4 sm:$0xff]  }
  0x64   :  { %1668 = vmatprep.subr.bf16.mxu0 %v1808_v54  ;;  %v1881_v54 = vld [vmem:[%s2266_s8 + $0x34] ss:$8 sps:$4 sm:$0xff]  }
  0x65   :  { %1689 = vmatpush3.bf16.msra.mxu1 %v1807_v53  ;;  %v1876_v53 = vld [vmem:[%s2266_s8 + $0x20] ss:$8 sps:$4 sm:$0xff]  }
  0x66   :  { %1690 = vmatprep.subr.bf16.mxu1 %v1810_v56  ;;  %v1884_v56 = vld [vmem:[%s2266_s8 + $0x44] ss:$8 sps:$4 sm:$0xff]  }
  0x67   :  { %1669 = vmatpush3.bf16.msra.mxu0 %v1809_v55  ;;  %v1879_v55 = vld [vmem:[%s2266_s8 + $0x30] ss:$8 sps:$4 sm:$0xff]  }
  0x68   :  { %1670 = vmatprep.subr.bf16.mxu0 %v1812_v58  ;;  %v1887_v58 = vld [vmem:[%s2266_s8 + $0x54] ss:$8 sps:$4 sm:$0xff]  }
  0x69   :  { %1691 = vmatpush3.bf16.msra.mxu1 %v1811_v57  ;;  %v1882_v57 = vld [vmem:[%s2266_s8 + $0x40] ss:$8 sps:$4 sm:$0xff]  }
  0x6a   :  { %1692 = vmatprep.subr.bf16.mxu1 %v1814_v60  ;;  %v1890_v60 = vld [vmem:[%s2266_s8 + $0x64] ss:$8 sps:$4 sm:$0xff]  }
  0x6b   :  { %1671 = vmatpush3.bf16.msra.mxu0 %v1813_v59  ;;  %v1885_v59 = vld [vmem:[%s2266_s8 + $0x50] ss:$8 sps:$4 sm:$0xff]  }
  0x6c   :  { %1672 = vmatprep.subr.bf16.mxu0 %v1816_v62  ;;  %v1893_v62 = vld [vmem:[%s2266_s8 + $0x74] ss:$8 sps:$4 sm:$0xff]  }
  0x6d   :  { %1693 = vmatpush3.bf16.msra.mxu1 %v1815_v61  ;;  %v1888_v61 = vld [vmem:[%s2266_s8 + $0x60] ss:$8 sps:$4 sm:$0xff]  }
  0x6e   :  { %1694 = vmatprep.subr.bf16.mxu1 %v1818_v0 }
  0x6f   :  { %1673 = vmatpush3.bf16.msra.mxu0 %v1817_v63  ;;  %v1891_v63 = vld [vmem:[%s2266_s8 + $0x70] ss:$8 sps:$4 sm:$0xff]  }
  0x70   :  { %1674 = vmatprep.subr.bf16.mxu0 %v1820_v2 }
  0x71   :  { %1695 = vmatpush3.bf16.msra.mxu1 %v1819_v1  ;;  %v1491_v1 = vld [vmem:[%s2261_s3] ss:$0 sm:$0xff] }
  0x72   :  { %1696 = vmatprep.subr.bf16.mxu1 %v1822_v4 }
  0x73   :  { %1675 = vmatpush3.bf16.msra.mxu0 %v1821_v3 }
  0x74   :  { %1704 = vmatprep.subr.bf16.mxu0 %v1826_v9 }
  0x75   :  { %1697 = vmatpush3.bf16.msra.mxu1 %v1825_v8 }
  0x76   :  { %737 = vmatmul.mubr.bf16.vlgmr.msra.gmra.mrb[4].mxu0 %v1496_v6  ;;  %1076 = vmatprep.subr.bf16.mxu1 %v1848_v32 }
  0x77   :  { %1705 = vmatpush3.bf16.msra.mxu0 %v1829_v13  ;;  %959 = vmatprep.mubr.bf16.mxu0 %v1566_v24 }
  0x78   :  { %777 = vmatmul.mubr.bf16.vlgmr.msra.gmra.mrb[4].mxu1 %v1498_v11  ;;  %1706 = vmatprep.subr.bf16.mxu0 %v1830_v14 }
  0x79   :  { %1077 = vmatpush1.bf16.msra.mxu1 %v1846_v31  ;;  %1108 = vmatprep.mubr.bf16.mxu1 %v1977_v49 }
  0x7a   :  { %1078 = vmatprep.subr.bf16.mxu1 %v1851_v33 }
  0x7b   :  { %1707 = vmatpush3.bf16.msra.mxu0 %v1831_v15 }
  0x7c   :  { %1708 = vmatprep.subr.bf16.mxu0 %v1832_v16 }
  0x7d   :  { %1079 = vmatpush1.bf16.msra.mxu1 %v1849_v34  ;;  %v1978_v34 = vmov 0.0  }
  0x7e   :  { %1080 = vmatprep.subr.bf16.mxu1 %v1854_v35  ;;  %v986_v35 = vlaneseq }
  0x7f   :  { %1709 = vmatpush3.bf16.msra.mxu0 %v1833_v17 }
  0x80   :  { %1710 = vmatprep.subr.bf16.mxu0 %v1834_v18 }
  0x81   :  { %1081 = vmatpush1.bf16.msra.mxu1 %v1852_v36  ;;  %v987_v36 = vshrl.u32 %v986_v35, 7 }
  0x82   :  { %1082 = vmatprep.subr.bf16.mxu1 %v1857_v37 }
  0x83   :  { %1711 = vmatpush3.bf16.msra.mxu0 %v1835_v19  ;;  %v992_v37 = vsub.s32 1, %v987_v36 }
  0x84   :  { %1712 = vmatprep.subr.bf16.mxu0 %v1836_v20 }
  0x85   :  { %1083 = vmatpush1.bf16.msra.mxu1 %v1855_v38  ;;  %v984_v38 = vld [vmem:[#allocation4] sm:$0x3] }
  0x86   :  { %1084 = vmatprep.subr.bf16.mxu1 %v1860_v39  ;;  %v993_v39 = vrot.slane %v984_v38, %v992_v37 }
  0x87   :  { %1713 = vmatpush3.bf16.msra.mxu0 %v1837_v21 }
  0x88   :  { %1714 = vmatprep.subr.bf16.mxu0 %v1838_v22 }
  0x89   :  { %1085 = vmatpush1.bf16.msra.mxu1 %v1858_v40 }
  0x8a   :  { %1086 = vmatprep.subr.bf16.mxu1 %v1863_v41 }
  0x8b   :  { %1715 = vmatpush3.bf16.msra.mxu0 %v1839_v25 }
  0x8c   :  { %1716 = vmatprep.subr.bf16.mxu0 %v1840_v26 }
  0x8d   :  { %1087 = vmatpush1.bf16.msra.mxu1 %v1861_v42 }
  0x8e   :  { %1088 = vmatprep.subr.bf16.mxu1 %v1866_v43 }
  0x8f   :  { %1717 = vmatpush3.bf16.msra.mxu0 %v1841_v27  ;;  %v1564_v27 = vld [vmem:[%s2263_s5] ss:$0 sm:$0xff] }
  0x90   :  { %1718 = vmatprep.subr.bf16.mxu0 %v1842_v28 }
  0x91   :  { %1089 = vmatpush1.bf16.msra.mxu1 %v1864_v44 }
  0x92   :  { %1090 = vmatprep.subr.bf16.mxu1 %v1869_v45  ;;  %v1134_v45 = vld [vmem:[#allocation6] sm:$0x3] }
  0x93   :  { %1719 = vmatpush3.bf16.msra.mxu0 %v1843_v29 }
  0x94   :  { %1226 = vmatprep.subr.bf16.mxu0 %v1872_v47 }
  0x95   :  { %1091 = vmatpush1.bf16.msra.mxu1 %v1867_v46  ;;  %v988_v46 = vsub.s32 0, %v987_v36 }
  0x96   :  { %960 = vmatmul.mubr.bf16.vlgmr.msra.gmra.mrb[8].mxu0 %v1565_v30  ;;  %1732 = vmatprep.subr.mxu1 %v1978_v34 }
  0x97   :  { %1227 = vmatpush1.bf16.msra.mxu0 %v1870_v48  ;;  %1258 = vmatprep.mubr.bf16.mxu0 %v1977_v49  ;;  %v1139_v47 = vrot.slane %v1134_v45, %v988_v46  ;;  %v1143_v48 = vrot.slane %v1134_v45, %v992_v37  ;;  %v989_v49 = vrot.slane %v984_v38, %v988_v46 }
  0x98   :  { %1228 = vmatprep.subr.bf16.mxu0 %v1875_v51 }
  0x9b   :  { %1229 = vmatpush1.bf16.msra.mxu0 %v1873_v50 }
  0x9c   :  { %1230 = vmatprep.subr.bf16.mxu0 %v1878_v52 }
  0x9f   :  { %1231 = vmatpush1.bf16.msra.mxu0 %v1876_v53 }
  0xa0   :  { %1232 = vmatprep.subr.bf16.mxu0 %v1881_v54 }
  0xa3   :  { %1233 = vmatpush1.bf16.msra.mxu0 %v1879_v55 }
  0xa4   :  { %1234 = vmatprep.subr.bf16.mxu0 %v1884_v56 }
  0xa7   :  { %1235 = vmatpush1.bf16.msra.mxu0 %v1882_v57 }
  0xa8   :  { %1236 = vmatprep.subr.bf16.mxu0 %v1887_v58 }
  0xab   :  { %1237 = vmatpush1.bf16.msra.mxu0 %v1885_v59  ;;  %v1338_v59 = vand.u32 127, %v986_v35 }
  0xac   :  { %1238 = vmatprep.subr.bf16.mxu0 %v1890_v60 }
  0xad   :  { %vm1339_vm2 = vcmp.lt.s32.totalorder %v1338_v59, 2 }
  0xaf   :  { %1239 = vmatpush1.bf16.msra.mxu0 %v1888_v61 }
  0xb0   :  { %1240 = vmatprep.subr.bf16.mxu0 %v1893_v62 }
  0xb3   :  { %1241 = vmatpush1.bf16.msra.mxu0 %v1891_v63 }
 0x129   :  { %v1632_v0 = vpop.f32.mrb[0].mxu0 }
 0x12a   :  { %v1633_v2 = vpop.f32.mrb[1].mxu0 }
 0x12b   :  { %v1634_v3 = vadd.f32 %v1633_v2, %v1632_v0  ;;  %v1635_v4 = vpop.f32.mrb[2].mxu0  ;;  %v1654_v5 = vpop.f32.mrb[0].mxu1 }
 0x12c   :  { %v1636_v6 = vpop.f32.mrb[3].mxu0  ;;  %v1655_v7 = vpop.f32.mrb[1].mxu1 }
 0x12d   :  { %v659_v8 = vadd.f32 %v1634_v3, %v1491_v1  ;;  %v1656_v9 = vadd.f32 %v1655_v7, %v1654_v5  ;;  %v1657_v10 = vpop.f32.mrb[2].mxu1 }
 0x12e   :  { %v1658_v11 = vpop.f32.mrb[3].mxu1 }
 0x12f   :  { %v699_v12 = vadd.f32 %v1656_v9, %v659_v8 }
 0x149   :  { %v1676_v13 = vpop.f32.mrb[4].mxu0 }
 0x14a   :  { %v1677_v14 = vpop.f32.mrb[5].mxu0 }
 0x14b   :  { %v1678_v15 = vadd.f32 %v1677_v14, %v1676_v13  ;;  %v1679_v16 = vpop.f32.mrb[6].mxu0  ;;  %v1698_v17 = vpop.f32.mrb[4].mxu1 }
 0x14c   :  { %v1680_v18 = vpop.f32.mrb[7].mxu0  ;;  %v1699_v20 = vpop.f32.mrb[5].mxu1 }
 0x14d   :  { %v739_v19 = vadd.f32 %v1678_v15, %v699_v12  ;;  %v1700_v21 = vadd.f32 %v1699_v20, %v1698_v17  ;;  %v1701_v22 = vpop.f32.mrb[6].mxu1 }
 0x14e   :  { %v1702_v23 = vpop.f32.mrb[7].mxu1 }
 0x14f   :  { %v779_v24 = vadd.f32 %v1700_v21, %v739_v19 }
 0x151   :  { %v967_v25 = vpack.c.bf16 %v779_v24, %v779_v24 }
 0x153   :  { %1109 = vmatmul.mubr.bf16.vlgmr.msra.gmra.mrb[8].mxu1 %v967_v25 }
 0x154   :  { %1734 = vmatprep.mubr.msk.f32.mxu1 %vm1979_vm0, %v1978_v34 }
 0x169   :  { %v1720_v26 = vpop.f32.mrb[8].mxu0 }
 0x16a   :  { %v1721_v28 = vpop.f32.mrb[9].mxu0 }
 0x16b   :  { %v1722_v29 = vadd.f32 %v1721_v28, %v1720_v26  ;;  %v1723_v30 = vpop.f32.mrb[10].mxu0 }
 0x16c   :  { %v1724_v31 = vpop.f32.mrb[11].mxu0 }
 0x16d   :  { %v962_v32 = vadd.f32 %v1722_v29, %v1564_v27 }
 0x16f   :  { %v1117_v33 = vpack.c.bf16 %v962_v32, %v962_v32 }
 0x171   :  { %1259 = vmatmul.mubr.bf16.vlgmr.msra.gmra.mrb[12].mxu0 %v1117_v33 }
 0x226   :  { %v1110_v40 = vpop.f32.mrb[8].mxu1 }
 0x227   :  { %v1112_v41 = vpop.f32.mrb[9].mxu1  ;;  %v1111_v56 = vadd.f32 %v1110_v40, %v989_v49 }
 0x228   :  { %v2244_v42 = vadd.f32 %v1112_v41, %v993_v39  ;;  %v1114_v43 = vpop.f32.mrb[10].mxu1 }
 0x229   :  { %v1115_v44 = vpop.f32.mrb[11].mxu1 }
 0x22a   :  { %v1402_v14 = vmul.f32 %v2244_v42, %v2244_v42 }
 0x244   :  { %v1260_v50 = vpop.f32.mrb[12].mxu0 }
 0x245   :  { %v1261_v51 = vadd.f32 %v1260_v50, %v1139_v47  ;;  %v1262_v52 = vpop.f32.mrb[13].mxu0 }
 0x246   :  { %v1263_v53 = vadd.f32 %v1262_v52, %v1143_v48  ;;  %v1264_v54 = vpop.f32.mrb[14].mxu0 }
 0x247   :  { %v1265_v55 = vpop.f32.mrb[15].mxu0  ;;  %1733 = vmatpush3.xpose.msra.mxu1 %v1261_v51 }
 0x248   :  { %v1354_v57 = vpack.c.bf16 %v1263_v53, %v1263_v53  ;;  %1737 = vmatprep.subr.bf16.mxu1 %v1978_v34 }
 0x24a   :  { %v1360_v58 = vsel %vm1358_vm1, %v1354_v57, 0  ;;  %1735 = vmatmul.mubr.f32.vlgmr.msra.gmra.mrb[12].mxu1 %v1111_v56 }
 0x24b   :  { %1738 = vmatpush3.bf16.msra.mxu1 %v1360_v58  ;;  %1739 = vmatprep.mubr.msk.bf16.mxu1 %vm1979_vm0, %v1978_v34 }
 0x24c   :  { %1743 = vmatprep.subr.mxu1 %v1978_v34 }
 0x31d   :  { %v1333_v60 = vpop.f32.mrb[12].mxu1 }
 0x31e   :  { %v1340_v61 = vsel %vm1339_vm2, %v1333_v60, -1e+30  ;;  %v1736_v62 = vpop.f32.mrb[13].mxu1 }
 0x31f   :  { %v1342_v63 = vsel %vm1341_vm3, %v1340_v61, -inf }
 0x320   :  { %1343 = vmax.xlane.f32.xlu0 %v1342_v63 }
 0x3ad   :  { %v1344_v0 = vpop.xlane.xlu0 %1343 }
 0x3ae   :  { %v1345_v1 = vsub.f32 %v1340_v61, %v1344_v0 }
 0x3b0   :  { %v1346_v2 = vmul.f32 1.442695, %v1345_v1 }
 0x3b2   :  { %1894 = vpow2.f32 %v1346_v2 }
 0x3bc   :  { %v1895_v3 = vpop.eup %1894 }
 0x3bd   :  { %v1348_v4 = vsel %vm1341_vm3, %v1895_v3, 0.0 }
 0x3be   :  { %1349 = vadd.xlane.f32.xlu0 %v1348_v4 }
 0x44b   :  { %v1350_v5 = vpop.xlane.xlu0 %1349 }
 0x44c   :  { %1896 = vrcp.f32 %v1350_v5 }
 0x456   :  { %v1897_v6 = vpop.eup %1896 }
 0x457   :  { %v1352_v7 = vmul.f32 %v1897_v6, %v1895_v3 }
 0x459   :  { %v1353_v8 = vpack.c.bf16 %v1352_v7, %v1352_v7 }
 0x45b   :  { %1740 = vmatmul.mubr.msk.bf16.vlgmr.msra.gmra.mrb[16].mxu1 %vm1341_vm3, %v1353_v8 }
 0x45c   :  { %1745 = vmatprep.mubr.msk.f32.mxu1 %vm1979_vm0, %v1978_v34 }
 0x52e   :  { %v1396_v9 = vpop.f32.mrb[16].mxu1 }
 0x52f   :  { %v1741_v10 = vpop.f32.mrb[17].mxu1  ;;  %v1408_v11 = vmul.f32 %v1396_v9, %v1396_v9 }
 0x530   :  { %v1399_v12 = vpop.f32.mrb[18].mxu1 }
 0x531   :  { %1409 = vadd.xlane.f32.xlu1 %v1408_v11  ;;  %v1742_v13 = vpop.f32.mrb[19].mxu1 }
 0x535   :  { %1403 = vadd.xlane.f32.xlu1 %v1402_v14 }
 0x5be   :  { %v1410_v15 = vpop.xlane.xlu1 %1409 }
 0x5bf   :  { %v1411_v16 = vadd.f32 1e-08, %v1410_v15 }
 0x5c1   :  { %1898 = vrsqrt.f32 %v1411_v16 }
 0x5c2   :  { %v1404_v17 = vpop.xlane.xlu1 %1403 }
 0x5c3   :  { %v1405_v18 = vadd.f32 1e-08, %v1404_v17 }
 0x5c5   :  { %1900 = vrsqrt.f32 %v1405_v18 }
 0x5cb   :  { %v1899_v19 = vpop.eup %1898 }
 0x5cc   :  { %v1413_v20 = vmul.f32 %v1899_v19, %v1396_v9 }
 0x5ce   :  { %1744 = vmatpush3.xpose.msra.mxu1 %v1413_v20 }
 0x5cf   :  { %v1901_v21 = vpop.eup %1900 }
 0x5d0   :  { %v1407_v22 = vmul.f32 %v1901_v21, %v2244_v42 }
 0x5d2   :  { %1746 = vmatmul.mubr.f32.vlgmr.msra.gmra.mrb[14].mxu1 %v1407_v22 }
 0x6a5   :  { %v1480_v23 = vpop.f32.mrb[14].mxu1 }
 0x6a6   :  { %1484 = vst.msk [vmem:[%s2268_s10] sm:$0xff] %vm1341_vm3, %v1480_v23  ;;  %v1747_v24 = vpop.f32.mrb[15].mxu1 }
 0x6a7   :  { %1489 = vsyncpa [#allocation3], 1 }
 0x6a8   :  { %1490 = vsyncpa [#allocation5], 1 }

</bundles_post_ra>
